<compile_context>
chip_gen: v5e
topology: v5e:2x2
jax: 0.10.0
libtpu: 0.0.40
codegen_flags: <defaults>
</compile_context>

<pallas_src>
import math
from functools import partial

import jax
import jax.numpy as jnp
from jax.experimental import pallas as pl
from jax.experimental.pallas import tpu as pltpu


# ----------------------------------------------------------------------------
# Parameter setup (glue): the sinusoidal positional-encoding table.
# ----------------------------------------------------------------------------
def make_pe_table(d_model: int, max_len: int) -> jnp.ndarray:
    assert d_model % 2 == 0, "PositionalEncoding requires an even d_model"
    position = jnp.arange(0, max_len, dtype=jnp.float32)[:, None]            # (L, 1)
    div_term = jnp.exp(
        jnp.arange(0, d_model, 2, dtype=jnp.float32) * -(math.log(10000.0) / d_model)
    )                                                                        # (D/2,)
    pe = jnp.zeros((max_len, d_model), dtype=jnp.float32)
    pe = pe.at[:, 0::2].set(jnp.sin(position * div_term))
    pe = pe.at[:, 1::2].set(jnp.cos(position * div_term))
    return pe                                                                # (max_len, d_model)


# ----------------------------------------------------------------------------
# Tiling / layout planner.
#   Returns (R, C, TR): per-batch view is (R, C); blocks are (TR, C).
#   - C: lane dim, a large multiple of 128 when L*D allows it (lane-dense stores),
#        otherwise falls back to the natural (L, D) layout.
#   - TR: rows per block, a multiple of 8 (or the full R), targeting ~2 MiB blocks
#         so 2x(x) + 2x(out) + 2x(pe) double-buffered stays well under the 32 MiB
#         scoped-VMEM default on every generation (incl. v7x's 64 MiB physical).
# ----------------------------------------------------------------------------
def _plan_layout(L: int, D: int, itemsize: int, target_bytes: int = 2 * 1024 * 1024):
    N = L * D
    if N % 128 == 0:
        C = 128
        for cand in (32768, 16384, 8192, 4096, 2048, 1024, 512, 256, 128):
            if N % cand == 0 and cand * itemsize <= target_bytes:
                C = cand
                break
        R = N // C
    else:
        # Can't make it lane-dense without padding; keep natural layout (last dim = full D).
        R, C = L, D

    max_rows = max(1, target_bytes // (C * itemsize))
    if R <= max_rows:
        TR = R
    else:
        tr = (min(max_rows, R) // 8) * 8
        while tr >= 8 and R % tr:
            tr -= 8
        TR = tr if tr >= 8 else R   # fallback: whole row if no nice divisor
    return R, C, TR


# ----------------------------------------------------------------------------
# Kernels
# ----------------------------------------------------------------------------
def pe_add_kernel(x_ref, pe_ref, o_ref):
    # Eval-mode forward: x + pe (dropout is identity in eval).
    # x_ref/o_ref blocks are (1, TR, C); indexing [0] squeezes the batch dim so the
    # add is a plain 2D VPU op with no broadcast.
    o_ref[0] = x_ref[0] + pe_ref[...]


def pe_add_dropout_kernel(seed_ref, x_ref, pe_ref, o_ref, *, p: float, rows: int, cols: int):
    # Train-mode forward: inverted dropout applied to (x + pe).
    y = x_ref[0] + pe_ref[...]                                   # (TR, C)

    # Stateless counter-based PRNG: hash(global element index, seed) in pure uint32 math.
    blk = (pl.program_id(0) * pl.num_programs(1) + pl.program_id(1)).astype(jnp.uint32)
    row_id = blk * jnp.uint32(rows) + jax.lax.broadcasted_iota(jnp.uint32, (rows, cols), 0)
    idx = row_id * jnp.uint32(cols) + jax.lax.broadcasted_iota(jnp.uint32, (rows, cols), 1)
    seed = seed_ref[0].astype(jnp.uint32)

    h = idx * jnp.uint32(0x9E3779B1) + seed * jnp.uint32(0x85EBCA77) + jnp.uint32(0x27D4EB2F)
    h = (h ^ (h >> 15)) * jnp.uint32(0x2C1B3C6D)
    h = (h ^ (h >> 12)) * jnp.uint32(0x297A2D39)
    h = h ^ (h >> 15)

    # keep with probability (1 - p): compare raw bits against an integer threshold
    # (no u32->f32 convert / shift / multiply chain).
    thr = jnp.uint32(min(int(p * 4294967296.0), 4294967295))
    keep = h >= thr

    scale = 1.0 / (1.0 - p)
    o_ref[0] = jnp.where(keep, y * scale, 0.0).astype(o_ref.dtype)


# ----------------------------------------------------------------------------
# Wrapper
# ----------------------------------------------------------------------------
def positional_encoding(x, pe_table, *, p: float = 0.1, training: bool = False, seed: int = 0):
    """x: (B, L, D);  pe_table: (max_len, D)."""
    B, L, D = x.shape
    # Static slice + dtype match (halves pe HBM traffic if the model runs bf16).
    pe = pe_table[:L, :].astype(x.dtype)

    R, C, TR = _plan_layout(L, D, x.dtype.itemsize)
    xf = x.reshape(B, R, C)
    pef = pe.reshape(R, C)
    n_rb = R // TR

    x_spec = pl.BlockSpec((1, TR, C), lambda b, r, *_: (b, r, 0))
    pe_spec = pl.BlockSpec((TR, C), lambda b, r, *_: (r, 0))      # broadcast over batch
    out_spec = pl.BlockSpec((1, TR, C), lambda b, r, *_: (b, r, 0))
    out_shape = jax.ShapeDtypeStruct((B, R, C), x.dtype)
    # Both grid axes are independent (stateless dropout hash) -> parallel on both,
    # so v7x's two TensorCores are used; no-op on single-TC v5e/v6e.
    cparams = pltpu.CompilerParams(dimension_semantics=("parallel", "parallel"))
    # NOTE: could add input_output_aliases to reuse x's HBM buffer when the caller donates x.

    if (not training) or p == 0.0:
        out = pl.pallas_call(
            pe_add_kernel,
            out_shape=out_shape,
            grid_spec=pltpu.PrefetchScalarGridSpec(
                num_scalar_prefetch=0,
                grid=(B, n_rb),
                in_specs=[x_spec, pe_spec],
                out_specs=out_spec,
            ),
            compiler_params=cparams,
        )(xf, pef)
    else:
        seed_arr = jnp.array([seed], dtype=jnp.int32)
        out = pl.pallas_call(
            partial(pe_add_dropout_kernel, p=float(p), rows=TR, cols=C),
            out_shape=out_shape,
            grid_spec=pltpu.PrefetchScalarGridSpec(
                num_scalar_prefetch=1,
                grid=(B, n_rb),
                in_specs=[x_spec, pe_spec],
                out_specs=out_spec,
            ),
            compiler_params=cparams,
        )(seed_arr, xf, pef)

    return out.reshape(B, L, D)


# ----------------------------------------------------------------------------
# Main
# ----------------------------------------------------------------------------
if __name__ == "__main__":
    B, L, D, MAX_LEN = 2, 8, 32, 60
    key = jax.random.PRNGKey(0)
    x = jax.random.normal(key, (B, L, D), dtype=jnp.float32)

    pe_table = make_pe_table(D, MAX_LEN)
    ref = x + pe_table[None, :L, :]

    # Eval-mode (dropout = identity): check against pure-JAX reference.
    out_eval = jax.block_until_ready(positional_encoding(x, pe_table, training=False))
    assert out_eval.shape == (B, L, D)
    assert jnp.allclose(out_eval, ref, atol=1e-6), "eval-mode mismatch"

    # Train-mode (dropout p=0.1 applied inside the kernel).
    p = 0.1
    out_train = jax.block_until_ready(
        positional_encoding(x, pe_table, p=p, training=True, seed=1234)
    )
    assert out_train.shape == (B, L, D)
    # Dropout scaling sanity: surviving entries equal ref / (1 - p), dropped entries are 0.
    surv = out_train != 0.0
    assert jnp.allclose(jnp.where(surv, out_train, 0.0),
                        jnp.where(surv, ref / (1.0 - p), 0.0), atol=1e-5)

    print("KERNEL_OK")
</pallas_src>

<mosaic_0001>
module attributes {stable_mosaic.version = 11 : i64} {
  func.func @pe_add_kernel(%arg0: i32, %arg1: i32, %arg2: memref<1x1x256xf32, #tpu.memory_space<vmem>>, %arg3: memref<1x256xf32, #tpu.memory_space<vmem>>, %arg4: memref<1x1x256xf32, #tpu.memory_space<vmem>>) attributes {dimension_semantics = [#tpu.dimension_semantics<parallel>, #tpu.dimension_semantics<parallel>], iteration_bounds = array<i64: 2, 1>, scalar_prefetch = 0 : i64, scratch_operands = 0 : i64, tpu.core_type = #tpu.core_type<tc>, window_params = [{transform_indices = @transform_0, window_bounds = array<i64: 1, 1, 256>}, {transform_indices = @transform_1, window_bounds = array<i64: 1, 256>}, {transform_indices = @transform_2, window_bounds = array<i64: 1, 1, 256>}]} {
    %c0 = arith.constant 0 : index
    %c0_0 = arith.constant 0 : index
    %c0_1 = arith.constant 0 : index
    %0 = vector.load %arg2[%c0, %c0_0, %c0_1] : memref<1x1x256xf32, #tpu.memory_space<vmem>>, vector<1x1x256xf32>
    %1 = vector.shape_cast %0 : vector<1x1x256xf32> to vector<1x256xf32>
    %c0_2 = arith.constant 0 : index
    %c0_3 = arith.constant 0 : index
    %2 = vector.load %arg3[%c0_2, %c0_3] : memref<1x256xf32, #tpu.memory_space<vmem>>, vector<1x256xf32>
    %3 = arith.addf %1, %2 : vector<1x256xf32>
    %c0_4 = arith.constant 0 : index
    %c0_5 = arith.constant 0 : index
    %c0_6 = arith.constant 0 : index
    %4 = vector.load %arg4[%c0_4, %c0_5, %c0_6] : memref<1x1x256xf32, #tpu.memory_space<vmem>>, vector<1x1x256xf32>
    %5 = vector.shape_cast %4 : vector<1x1x256xf32> to vector<1x256xf32>
    %6 = vector.shape_cast %3 : vector<1x256xf32> to vector<1x1x256xf32>
    tpu.vector_store %arg4[%c0_4, %c0_5, %c0_6], %6 {strides = array<i32>} : memref<1x1x256xf32, #tpu.memory_space<vmem>>, vector<1x1x256xf32>,
    return
  }
  func.func @transform_0(%arg0: i32, %arg1: i32) -> (i32, i32, i32) {
    %c0_i32 = arith.constant 0 : i32
    %c0_i32_0 = arith.constant 0 : i32
    return %arg0, %arg1, %c0_i32 : i32, i32, i32
  }
  func.func @transform_1(%arg0: i32, %arg1: i32) -> (i32, i32) {
    %c0_i32 = arith.constant 0 : i32
    %c0_i32_0 = arith.constant 0 : i32
    return %arg1, %c0_i32 : i32, i32
  }
  func.func @transform_2(%arg0: i32, %arg1: i32) -> (i32, i32, i32) {
    %c0_i32 = arith.constant 0 : i32
    %c0_i32_0 = arith.constant 0 : i32
    return %arg0, %arg1, %c0_i32 : i32, i32, i32
  }
}

</mosaic_0001>

<bundles_post_ra>
// kernel: tpu_custom_call.1
= control target key start
LH: loop header
LB: loop body
LE: loop exit
PB: predicated region body
PF: predicated region fallthrough
CT: control target
= control target key end

     0   :  { %7 = vsyncpa [#allocation3], 0  ;;  %s722_s0 = inlined_call_operand.hbm [shape: f32[2,1,256], index: 0, kind: input, shape index: {}]   ;;  %s723_s1 = inlined_call_operand.hbm [shape: f32[1,256], index: 1, kind: input, shape index: {}]   ;;  %s724_s2 = inlined_call_operand.hbm [shape: f32[2,1,256], index: 2, kind: output, shape index: {}]  }
   0x1   :  { %9 = vsyncpa [#allocation3 + $0x1], 0 }
   0x2   :  { %10 = vsyncpa [#allocation6], 0 }
   0x3   :  { %11 = vsyncpa [#allocation4], 0 }
   0x4   :  { %13 = vsyncpa [#allocation4 + $0x1], 0  ;;  %s573_s9 = smov 0   ;;  %s575_s10 = smov 0  }
   0x5   :  { %s577_s11 = smov 0   ;;  %s579_s12 = smov 0  }
   0x6   :  { %s581_s13 = smov 0   ;;  %s583_s14 = smov 0  }
   0x7 LB: > { %s321_s15 = sadd.s32 4294967295, %s555_s14   ;;  %s322_s16 = sadd.s32 4294967294, %s555_s14   ;;  %s555_s14 = sphi %s583_s14, %s19_s14   ;;  %s551_s13 = sphi %s581_s13, %s736_s13   ;;  %s547_s12 = sphi %s579_s12, %s735_s12   ;;  %s543_s11 = sphi %s577_s11, %s734_s11   ;;  %s539_s10 = sphi %s575_s10, %s733_s10   ;;  %s535_s9 = sphi %s573_s9, %s732_s9  }
   0x8   : > { %p53_p0 = scmp.ne.s32.totalorder %s539_s10, %s535_s9  ;;  %p607_p1 = scmp.eq.s32.totalorder %s321_s15, 0 }
   0x9   : > { %p611_p2 = scmp.eq.s32.totalorder %s321_s15, 1  ;;  %p111_p3 = scmp.eq.s32.totalorder %s322_s16, 1 }
   0xa   : > { %p617_p4 = por %p607_p1, %p53_p0  ;;  %p323_p5 = scmp.ge.s32.totalorder %s555_s14, 1 }
   0xb   : > { %p622_p6 = por %p111_p3, %p53_p0  ;;  %p118_p7 = scmp.lt.s32.totalorder %s555_s14, 3 }
   0xc   : > { %s132_s23 = sshll.u32 %s723_s1, 4  ;;  %p325_p9 = scmp.ge.s32.totalorder %s555_s14, 2  ;;  %s133_s23 = int_to_ptr.hbm [resolvable:$true] %s132_s23 }
   0xd   : > { %p630_p8 = pnand %p323_p5, %p118_p7  ;;  %s557_s25 = smov [#allocation5]  }
   0xe   : > { %s134_s26 = sshll.u32 %s557_s25, 4  ;;  %s31_s27 = sadd.s32 1, %s551_s13  ;;  %s135_s26 = int_to_ptr.vmem [resolvable:$true] %s134_s26 }
   0xf   : > { %p344_p10 = pneg %p630_p8  ;;  %p33_p12 = scmp.ge.s32.totalorder %s31_s27, 2 }
  0x10   : > { %s40_s28 = sadd.s32 1, %s543_s11  ;;  %p47_p13 = scmp.ne.s32.totalorder %s543_s11, %s539_s10 }
  0x11   : > { %p345_p11 = pnand %p344_p10, %p607_p1  ;;  %p48_p0 = scmp.eq.s32.totalorder %s555_s14, 0 }
  0x12   : > { %s738_s27 = smov (%p33_p12, %s31_s27), 0  ;;  %p652_p5 = por %p611_p2, %p47_p13 }
  0x13   : > { %347 = dma.hbm_to_vmem [thread:$0]  (!%p345_p11), %s133_s23, 32, %s135_s26, [#allocation6]  }
  0x14   : > { %p646_p3 = por %p48_p0, %p47_p13  ;;  %s35_s3 = ssub.s32 %s551_s13, %s738_s27 }
  0x15   : > { %p357_p7 = scmp.lt.s32.totalorder %s555_s14, 2  ;;  %p38_p10 = scmp.eq.s32.totalorder %s35_s3, 0 }
  0x16   : > { %s145_s4 = sand.u32 1, %s543_s11   ;;  %s327_s7 = sshll.u32 %s551_s13, 1 }
  0x17   : > { %s326_s5 = sshll.u32 %s145_s4, 1  ;;  %s155_s16 = scalar_lea.hbm %s722_s0, %s327_s7 }
  0x18   : > { %s661_s6 = scalar_select %p38_p10, %s543_s11, %s40_s28  }
  0x19   : > { %s149_s21 = scalar_lea.vmem [#allocation2], %s326_s5  ;;  %s157_s18 = sshll.u32 %s155_s16, 4  ;;  %s158_s18 = int_to_ptr.hbm [resolvable:$true] %s157_s18 }
  0x1a   : > { %s159_s22 = sshll.u32 %s149_s21, 4  ;;  %p349_p2 = pnand %p357_p7, %p646_p3  ;;  %s160_s22 = int_to_ptr.vmem [resolvable:$true] %s159_s22 }
  0x1b   : > { %s146_s23 = scalar_lea.sflag [#allocation3], %s145_s4  ;;  %168 = sbr.rel (%p630_p8) target bundleno = 50 (0x32), region = 28 }
  0x1c   : > { %351 = dma.hbm_to_vmem [thread:$0]  (!%p349_p2), %s158_s18, 32, %s160_s22, %s146_s23  }
  0x1d   : > { %s672_s25 = sand.u32 (!%p630_p8), 1, %s539_s10  }
  0x1e   : > { %s329_s26 = sshll.u32 (!%p630_p8), %s672_s25, 1  ;;  %s171_s28 = scalar_lea.sflag (!%p630_p8), [#allocation3], %s672_s25 }
  0x1f   : > { %s174_s3 = scalar_lea.vmem (!%p630_p8), [#allocation2], %s329_s26 }
  0x20   : > { %522 = dma.done.wait (%p617_p4), %s171_s28, 32  }
  0x21   : > { %524 = vsyncadd (%p617_p4), %s171_s28, 4294967264 }
  0x22   : > { %526 = dma.done.wait (%p607_p1), [#allocation6], 32  }
  0x23   : > { %528 = vsyncadd (%p607_p1), [#allocation6], 4294967264  ;;  %s333_s24 = sshll.u32 %s547_s12, 1  ;;  %v204_v0 = vlaneseq  ;;  %s200_s7 = scalar_lea.vmem [#allocation7], %s329_s26  ;;  %v201_v1 = vld [vmem:[%s174_s3] sm:$0x3] }
  0x24   : > { %s222_s5 = scalar_lea.hbm %s724_s2, %s333_s24  ;;  %s224_s8 = sshll.u32 %s200_s7, 4  ;;  %v202_v2 = vld [vmem:[#allocation5] sm:$0x3]  ;;  %s225_s8 = int_to_ptr.vmem [resolvable:$true] %s224_s8 }
  0x25   : > { %s226_s15 = sshll.u32 %s222_s5, 4  ;;  %vm206_vm0 = vcmp.lt.s32.totalorder %v204_v0, 256  ;;  %v203_v3 = vadd.f32 %v202_v2, %v201_v1  ;;  %s210_s17 = scalar_lea.sflag [#allocation4], %s672_s25  ;;  %s227_s15 = int_to_ptr.hbm [resolvable:$true] %s226_s15 }
  0x26   : > { %s483_s19 = sshra.s32 %s227_s15, 4  ;;  %s489_s22 = scalar_lea.hbm %s724_s2, 4  ;;  %s484_s19 = int_to_ptr.hbm [resolvable:$true] %s483_s19 }
  0x27   : > { %208 = vst.msk [vmem:[%s200_s7] sm:$0x3] %vm206_vm0, %v203_v3  ;;  %s485_s12 = scalar_lea.hbm %s484_s19, 2  ;;  %p490_p11 = scmp.lt.s32.totalorder %s484_s19, %s724_s2 }
  0x28   : > { %p486_p1 = scmp.ne.s32.totalorder %s484_s19, %s485_s12  ;;  %p491_p12 = scmp.lt.s32.totalorder %s489_s22, %s485_s12 }
  0x2a   : > { %p487_p4 = pnand %p486_p1, %p652_p5  ;;  %p492_p13 = por %p491_p12, %p490_p11 }
  0x2c   : > { %p488_p8 = pneg %p487_p4 }
  0x2e   : > { %p493_p0 = pnand %p492_p13, %p488_p8 }
  0x30   : > { %496 = shalt.err (!%p493_p0)
}
  0x31   : > { %342 = dma.vmem_to_hbm [thread:$0]  (%p652_p5), %s225_s8, 32, %s227_s15, %s210_s17  }
  0x32 PF: > { %s238_s25 = sand.u32 1, %s535_s9   ;;  %p353_p3 = pnand %p325_p9, %p622_p6 }
  0x33   : > { %s239_s26 = scalar_lea.sflag [#allocation4], %s238_s25 }
  0x34   : > { %p354_p7 = pneg %p353_p3 }
  0x36   : > { %530 = dma.done.wait (%p354_p7), %s239_s26, 32  }
  0x37   : > { %532 = vsyncadd (%p354_p7), %s239_s26, 4294967264  ;;  %s19_s14 = sadd.s32 1, %s555_s14   ;;  %s732_s9 = smov %s539_s10 }
  0x38   : > { %p16_p10 = scmp.ge.s32.totalorder %s19_s14, 4   ;;  %s733_s10 = smov %s543_s11 }
  0x39   : > { %s734_s11 = smov %s661_s6  ;;  %s735_s12 = smov %s551_s13 }
  0x3a   : > { %s736_s13 = smov %s738_s27  ;;  %18 = sbr.rel (!%p16_p10) target bundleno = 7 (0x7), region = 78 }
  0x3f   :  { %245 = vsyncpa [#allocation3], 1 }
  0x40   :  { %247 = vsyncpa [#allocation3 + $0x1], 1 }
  0x41   :  { %248 = vsyncpa [#allocation6], 1 }
  0x42   :  { %249 = vsyncpa [#allocation4], 1 }
  0x43   :  { %251 = vsyncpa [#allocation4 + $0x1], 1 }

</bundles_post_ra>
